<compile_context>
chip_gen: v5e
topology: v5e:2x2
jax: 0.10.0
libtpu: 0.0.40
codegen_flags: <defaults>
</compile_context>

<pallas_src>
import math

import jax
import jax.numpy as jnp
from jax.experimental import pallas as pl
from jax.experimental.pallas import tpu as pltpu

inS = 1
interS = 128
nL = 3
outS = 2


def _mlp_kernel(x_ref, w0r_ref, wmt_ref, w4tp_ref, o_ref):
    # x_ref:    (TB, 1)      f32  batch tile
    # w0r_ref:  (1, 128)     f32  W0 as a row (== W0.T since inS == 1)
    # wmt_ref:  (128, 128)   f32  shared middle weight, transposed
    # w4tp_ref: (128, 128)   f32  W4.T zero-padded to 128 output lanes
    # o_ref:    (TB, 128)    f32  lane-dense output slab (cols 0:2 are real)

    # Layer 0: K=1 outer product on the MXU (MXU has slack; keeps the lane
    # broadcast off the VALU/XLU, which carry the sin() work).
    h = jnp.sin(jnp.dot(x_ref[...], w0r_ref[...],
                        preferred_element_type=jnp.float32))   # (TB, 128)

    wmt = wmt_ref[...]                               # (128, 128), shared weight
    for _ in range(nL):                              # static unroll, 3 layers
        h = jnp.sin(jnp.dot(h, wmt, preferred_element_type=jnp.float32))

    out = jnp.sin(jnp.dot(h, w4tp_ref[...], preferred_element_type=jnp.float32))
    o_ref[...] = out.astype(o_ref.dtype)             # lane-dense (unmasked) store


def _round_up(n, m):
    return ((n + m - 1) // m) * m


def _choose_tiling(B, tb):
    """Pick (TB, Bp, n_steps): >=2 steps when possible (v7x megacore), and
    TB derived from the step count so ragged batches pad < 8 rows per step."""
    n = max(1, -(-B // tb))          # ceil(B / tb)
    if B >= 16:
        n = max(n, 2)                # both v7x TensorCores get work
    TB = _round_up(-(-B // n), 8)    # round_up(ceil(B / n), 8)
    Bp = n * TB
    return TB, Bp, n


def prepare_params(w0, wm, w4):
    """One-time weight layout prep (hoisted out of the per-call path).

    w0: (interS, inS), wm: (interS, interS), w4: (outS, interS) in PyTorch
    [out, in] layout. Returns kernel-layout weights.
    """
    w0_row = jnp.asarray(w0, jnp.float32).T.reshape(1, interS)        # (1, 128)
    wmt = jnp.asarray(wm, jnp.float32).T                               # (128, 128)
    # Pad the 2-wide output weight to 128 lanes so the kernel's store is
    # lane-dense; extra columns are sin(0)=0 and get sliced off in the wrapper.
    w4t_pad = jnp.zeros((interS, interS), jnp.float32)
    w4t_pad = w4t_pad.at[:, :outS].set(jnp.asarray(w4, jnp.float32).T)
    return w0_row, wmt, w4t_pad


def net_forward(x, params, *, tb=2048):
    """x: (B, inS) f32. params: output of prepare_params. Returns (B, outS)."""
    w0_row, wmt, w4t_pad = params
    B = x.shape[0]
    if B == 0:
        return jnp.zeros((0, outS), jnp.float32)

    TB, Bp, grid_b = _choose_tiling(B, tb)
    if Bp != B:
        x = jnp.pad(x, ((0, Bp - B), (0, 0)))

    flops = int(2 * Bp * interS * interS * (nL + 1) + 2 * Bp * interS)
    transcendentals = int((nL + 2) * Bp * interS)
    bytes_accessed = int(
        4 * (Bp * inS + interS + 2 * interS * interS + Bp * interS))

    out_pad = pl.pallas_call(
        _mlp_kernel,
        out_shape=jax.ShapeDtypeStruct((Bp, interS), jnp.float32),
        grid=(grid_b,),
        in_specs=[
            pl.BlockSpec((TB, inS), lambda i: (i, 0)),           # x tile
            pl.BlockSpec((1, interS), lambda i: (0, 0)),         # W0 row (resident)
            pl.BlockSpec((interS, interS), lambda i: (0, 0)),    # Wm.T (resident)
            pl.BlockSpec((interS, interS), lambda i: (0, 0)),    # W4.T padded (resident)
        ],
        out_specs=pl.BlockSpec((TB, interS), lambda i: (i, 0)),
        compiler_params=pltpu.CompilerParams(
            dimension_semantics=("parallel",),
            vmem_limit_bytes=32 * 1024 * 1024),
        cost_estimate=pl.CostEstimate(
            flops=flops,
            transcendentals=transcendentals,
            bytes_accessed=bytes_accessed),
    )(x, w0_row, wmt, w4t_pad)

    return out_pad[:B, :outS]


def _kaiming_uniform(key, shape):
    # torch.nn.init.kaiming_uniform_ default: a=0, fan_in, leaky_relu
    # bound = sqrt(2) * sqrt(3 / fan_in) = sqrt(6 / fan_in)
    fan_in = shape[1]
    bound = math.sqrt(6.0 / fan_in)
    return jax.random.uniform(key, shape, jnp.float32, -bound, bound)


if __name__ == "__main__":
    key = jax.random.PRNGKey(0)
    k_x, k0, km, k4 = jax.random.split(key, 4)

    # PyTorch Linear weight layout: [out_features, in_features]
    w0 = _kaiming_uniform(k0, (interS, inS))      # Linear(1, 128)
    wm = _kaiming_uniform(km, (interS, interS))   # shared Linear(128, 128)
    w4 = _kaiming_uniform(k4, (outS, interS))     # Linear(128, 2)

    params = prepare_params(w0, wm, w4)           # one-time layout prep

    def ref_forward(xx):
        h = jnp.sin(xx @ w0.T)
        for _ in range(nL):
            h = jnp.sin(h @ wm.T)
        return jnp.sin(h @ w4.T)

    # Deterministic tests: single-tile batch, ragged batch (pad + slice path),
    # and a multi-step batch (exercises the >=2-step grid).
    for B in (8, 37, 300):
        x = jax.random.normal(jax.random.fold_in(k_x, B), (B, inS), jnp.float32)
        out = jax.block_until_ready(net_forward(x, params))
        ref = ref_forward(x)
        assert out.shape == (B, outS)
        assert jnp.allclose(out, ref, atol=1e-5, rtol=1e-5)

    print("KERNEL_OK")
</pallas_src>

<mosaic_0001>
module attributes {stable_mosaic.version = 11 : i64} {
  func.func @_mlp_kernel(%arg0: i32, %arg1: memref<8x1xf32, #tpu.memory_space<vmem>>, %arg2: memref<1x128xf32, #tpu.memory_space<vmem>>, %arg3: memref<128x128xf32, #tpu.memory_space<vmem>>, %arg4: memref<128x128xf32, #tpu.memory_space<vmem>>, %arg5: memref<8x128xf32, #tpu.memory_space<vmem>>) attributes {dimension_semantics = [#tpu.dimension_semantics<parallel>], iteration_bounds = array<i64: 1>, scalar_prefetch = 0 : i64, scratch_operands = 0 : i64, tpu.core_type = #tpu.core_type<tc>, window_params = [{transform_indices = @transform_0, window_bounds = array<i64: 8, 1>}, {pipeline_mode = #tpu.pipeline_mode<synchronous>, transform_indices = @transform_1, window_bounds = array<i64: 1, 128>}, {pipeline_mode = #tpu.pipeline_mode<synchronous>, transform_indices = @transform_2, window_bounds = array<i64: 128, 128>}, {pipeline_mode = #tpu.pipeline_mode<synchronous>, transform_indices = @transform_3, window_bounds = array<i64: 128, 128>}, {transform_indices = @transform_4, window_bounds = array<i64: 8, 128>}]} {
    %c0 = arith.constant 0 : index
    %c0_0 = arith.constant 0 : index
    %0 = vector.load %arg1[%c0, %c0_0] : memref<8x1xf32, #tpu.memory_space<vmem>>, vector<8x1xf32>
    %c0_1 = arith.constant 0 : index
    %c0_2 = arith.constant 0 : index
    %1 = vector.load %arg2[%c0_1, %c0_2] : memref<1x128xf32, #tpu.memory_space<vmem>>, vector<1x128xf32>
    %cst = arith.constant dense<0.000000e+00> : vector<8x128xf32>
    %2 = tpu.matmul %0, %1, %cst {dimension_numbers = #tpu.dot_dimension_numbers<[1], [0], [0], [1], [0, 0, 1, 1], [], []>} : vector<8x1xf32>, vector<1x128xf32>, vector<8x128xf32> -> vector<8x128xf32>
    %3 = math.sin %2 : vector<8x128xf32>
    %c0_3 = arith.constant 0 : index
    %c0_4 = arith.constant 0 : index
    %4 = vector.load %arg3[%c0_3, %c0_4] : memref<128x128xf32, #tpu.memory_space<vmem>>, vector<128x128xf32>
    %cst_5 = arith.constant dense<0.000000e+00> : vector<8x128xf32>
    %5 = tpu.matmul %3, %4, %cst_5 {dimension_numbers = #tpu.dot_dimension_numbers<[1], [0], [0], [1], [0, 0, 1, 1], [], []>} : vector<8x128xf32>, vector<128x128xf32>, vector<8x128xf32> -> vector<8x128xf32>
    %6 = math.sin %5 : vector<8x128xf32>
    %cst_6 = arith.constant dense<0.000000e+00> : vector<8x128xf32>
    %7 = tpu.matmul %6, %4, %cst_6 {dimension_numbers = #tpu.dot_dimension_numbers<[1], [0], [0], [1], [0, 0, 1, 1], [], []>} : vector<8x128xf32>, vector<128x128xf32>, vector<8x128xf32> -> vector<8x128xf32>
    %8 = math.sin %7 : vector<8x128xf32>
    %cst_7 = arith.constant dense<0.000000e+00> : vector<8x128xf32>
    %9 = tpu.matmul %8, %4, %cst_7 {dimension_numbers = #tpu.dot_dimension_numbers<[1], [0], [0], [1], [0, 0, 1, 1], [], []>} : vector<8x128xf32>, vector<128x128xf32>, vector<8x128xf32> -> vector<8x128xf32>
    %10 = math.sin %9 : vector<8x128xf32>
    %c0_8 = arith.constant 0 : index
    %c0_9 = arith.constant 0 : index
    %11 = vector.load %arg4[%c0_8, %c0_9] : memref<128x128xf32, #tpu.memory_space<vmem>>, vector<128x128xf32>
    %cst_10 = arith.constant dense<0.000000e+00> : vector<8x128xf32>
    %12 = tpu.matmul %10, %11, %cst_10 {dimension_numbers = #tpu.dot_dimension_numbers<[1], [0], [0], [1], [0, 0, 1, 1], [], []>} : vector<8x128xf32>, vector<128x128xf32>, vector<8x128xf32> -> vector<8x128xf32>
    %13 = math.sin %12 : vector<8x128xf32>
    %c0_11 = arith.constant 0 : index
    %c0_12 = arith.constant 0 : index
    %14 = vector.load %arg5[%c0_11, %c0_12] : memref<8x128xf32, #tpu.memory_space<vmem>>, vector<8x128xf32>
    tpu.vector_store %arg5[%c0_11, %c0_12], %13 {strides = array<i32>} : memref<8x128xf32, #tpu.memory_space<vmem>>, vector<8x128xf32>,
    return
  }
  func.func @transform_0(%arg0: i32) -> (i32, i32) {
    %c0_i32 = arith.constant 0 : i32
    %c0_i32_0 = arith.constant 0 : i32
    return %arg0, %c0_i32 : i32, i32
  }
  func.func @transform_1(%arg0: i32) -> (i32, i32) {
    %c0_i32 = arith.constant 0 : i32
    %c0_i32_0 = arith.constant 0 : i32
    %c0_i32_1 = arith.constant 0 : i32
    return %c0_i32, %c0_i32_0 : i32, i32
  }
  func.func @transform_2(%arg0: i32) -> (i32, i32) {
    %c0_i32 = arith.constant 0 : i32
    %c0_i32_0 = arith.constant 0 : i32
    %c0_i32_1 = arith.constant 0 : i32
    return %c0_i32, %c0_i32_0 : i32, i32
  }
  func.func @transform_3(%arg0: i32) -> (i32, i32) {
    %c0_i32 = arith.constant 0 : i32
    %c0_i32_0 = arith.constant 0 : i32
    %c0_i32_1 = arith.constant 0 : i32
    return %c0_i32, %c0_i32_0 : i32, i32
  }
  func.func @transform_4(%arg0: i32) -> (i32, i32) {
    %c0_i32 = arith.constant 0 : i32
    %c0_i32_0 = arith.constant 0 : i32
    return %arg0, %c0_i32 : i32, i32
  }
}

</mosaic_0001>

<bundles_post_ra>
// kernel: tpu_custom_call.1
= control target key start
LH: loop header
LB: loop body
LE: loop exit
PB: predicated region body
PF: predicated region fallthrough
CT: control target
= control target key end

     0   :  { %9 = vsyncpa [#allocation3], 0  ;;  %s1471_s0 = inlined_call_operand.vmem [shape: f32[8,1], index: 0, kind: input, shape index: {}]   ;;  %s1472_s1 = inlined_call_operand.vmem [shape: f32[1,128], index: 1, kind: input, shape index: {}]   ;;  %s1473_s2 = inlined_call_operand.hbm [shape: f32[128,128], index: 2, kind: input, shape index: {}]   ;;  %s1474_s3 = inlined_call_operand.hbm [shape: f32[128,128], index: 3, kind: input, shape index: {}]   ;;  %s1475_s4 = inlined_call_operand.hbm [shape: f32[8,128], index: 4, kind: output, shape index: {}]  }
   0x1   :  { %10 = vsyncpa [#allocation6], 0 }
   0x2   :  { %11 = vsyncpa [#allocation4], 0  ;;  %s20_s17 = sshll.u32 %s1473_s2, 4  ;;  %s1093_s18 = smov [#allocation2]   ;;  %s21_s17 = int_to_ptr.hbm [resolvable:$true] %s20_s17 }
   0x3   :  { %s22_s19 = sshll.u32 %s1093_s18, 4  ;;  %s33_s22 = sshll.u32 %s1474_s3, 4  ;;  %s23_s19 = int_to_ptr.vmem [resolvable:$true] %s22_s19  ;;  %s34_s22 = int_to_ptr.hbm [resolvable:$true] %s33_s22 }
   0x4   :  { %s1094_s23 = smov 128   ;;  %s1095_s24 = smov 8  }
   0x5   :  { %28 = dma.hbm_to_vmem [thread:$0]  %s21_s17, 2048, %s23_s19, [#allocation3], %s1094_s23, %s1094_s23, %s1095_s24  }
   0x6   :  { %s1096_s25 = smov [#allocation5]  }
   0x7   :  { %s35_s26 = sshll.u32 %s1096_s25, 4  ;;  %s36_s26 = int_to_ptr.vmem [resolvable:$true] %s35_s26 }
   0x8   :  { %41 = dma.hbm_to_vmem [thread:$0]  %s34_s22, 2048, %s36_s26, [#allocation6], %s1094_s23, %s1094_s23, %s1095_s24  }
   0x9   :  { %1087 = dma.done.wait [#allocation3], 2048  }
   0xa   :  { %1088 = vsyncadd [#allocation3], 4294965248 }
   0xb   :  { %1089 = dma.done.wait [#allocation6], 2048  }
   0xc   :  { %1090 = vsyncadd [#allocation6], 4294965248  ;;  %vm56_vm0 = vcmask 1040384   ;;  %vm52_vm1 = vcmask 7168   ;;  %v51_v0 = vld [vmem:[%s1472_s1] sm:$0x1] }
   0xd   :  { %v50_v1 = vld [vmem:[%s1471_s0] sm:$0xff]  ;;  %986 = vmatpush.msk.msra.mxu0 %vm56_vm0, %v51_v0  ;;  %v1097_v14 = vmov 683565275   ;;  %v1098_v16 = vmov 2475754826   ;;  %v1103_v62 = vmov 0  }
   0xe   :  { %987 = vmatmul.msk.f32.vlgmr.msra.gmra.mxu0 %vm52_vm1, %v50_v1  ;;  %v1099_v19 = vmov 2131351028   ;;  %v1100_v22 = vmov 2102212464   ;;  %v1101_v25 = vmov 920167782  }
   0xf   :  { %v1102_v28 = vmov 1326507024   ;;  %s1104_s0 = smov [#allocation7]   ;;  %s975_s5 = sshll.u32 %s1475_s4, 4  ;;  %s976_s5 = int_to_ptr.hbm [resolvable:$true] %s975_s5 }
  0x10   :  { %s973_s1 = sshll.u32 %s1104_s0, 4  ;;  %s974_s1 = int_to_ptr.vmem [resolvable:$true] %s973_s1 }
  0x8b   :  { %v1142_v2 = vpop.f32.mrf.mxu0 }
  0x8c   :  { %v83_v3 = vand.u32 2139095040, %v1142_v2  ;;  %v80_v6 = vand.u32 2147483647, %v1142_v2  ;;  %vm82_vm14 = vcmp.lt.s32.totalorder %v1142_v2, 0 }
  0x8e   :  { %v84_v4 = vshrl.u32 %v83_v3, 23  ;;  %v87_v8 = vand.u32 8388607, %v80_v6  ;;  %vm81_vm15 = vcmp.le.f32.partialorder %v80_v6, 0.7853982 }
  0x90   :  { %v988_v5 = vadd.s32 4294967169, %v84_v4  ;;  %v88_v12 = vor.u32 8388608, %v87_v8 }
  0x92   :  { %v90_v7 = vadd.s32 1, %v988_v5  ;;  %v1168_v35 = vshll.u32 %v88_v12, 8 }
  0x94   :  { %vm91_vm2 = vcmp.gt.s32.totalorder %v90_v7, 0  ;;  %v129_v44 = vand.u32 65535, %v1168_v35  ;;  %v130_v45 = vshrl.u32 %v1168_v35, 16 }
  0x95   :  { %v92_v9 = vsel %vm91_vm2, %v90_v7, 0 }
  0x96   :  { %v94_v10 = vand.u32 31, %v92_v9  ;;  %v1150_v13 = vshrl.u32 %v92_v9, 5 }
  0x98   :  { %v1148_v11 = vsub.s32 32, %v94_v10  ;;  %v97_v15 = vshll.u32 %v1097_v14, %v94_v10  ;;  %v100_v17 = vshll.u32 %v1098_v16, %v94_v10  ;;  %v103_v21 = vshll.u32 %v1099_v19, %v94_v10 }
  0x99   :  { %v106_v24 = vshll.u32 %v1100_v22, %v94_v10  ;;  %v109_v27 = vshll.u32 %v1101_v25, %v94_v10  ;;  %vm112_vm3 = vcmp.lt.s32.totalorder %v1150_v13, 1  ;;  %vm115_vm4 = vcmp.lt.s32.totalorder %v1150_v13, 4 }
  0x9a   :  { %v98_v18 = vshrl.u32 %v1098_v16, %v1148_v11  ;;  %v101_v20 = vshrl.u32 %v1099_v19, %v1148_v11  ;;  %v104_v23 = vshrl.u32 %v1100_v22, %v1148_v11  ;;  %v107_v26 = vshrl.u32 %v1101_v25, %v1148_v11 }
  0x9b   :  { %v110_v29 = vshrl.u32 %v1102_v28, %v1148_v11  ;;  %vm114_vm5 = vcmp.lt.s32.totalorder %v1150_v13, 3  ;;  %vm113_vm6 = vcmp.lt.s32.totalorder %v1150_v13, 2  ;;  %v96_v9 = vshrl.u32 %v1097_v14, %v1148_v11 }
  0x9c   :  { %v99_v30 = vor.u32 %v98_v18, %v97_v15  ;;  %v102_v31 = vor.u32 %v101_v20, %v100_v17  ;;  %v105_v32 = vor.u32 %v104_v23, %v103_v21  ;;  %v108_v33 = vor.u32 %v107_v26, %v106_v24 }
  0x9d   :  { %v111_v34 = vor.u32 %v110_v29, %v109_v27  ;;  %v250_v29 = vld [vmem:[#allocation2 + $0x78] sm:$0xff] }
  0x9e   :  { %v120_v36 = vsel %vm112_vm3, %v99_v30, %v102_v31  ;;  %v124_v37 = vsel %vm112_vm3, %v102_v31, %v105_v32  ;;  %v121_v38 = vsel %vm115_vm4, %v108_v33, 920167782  ;;  %v117_v5 = vsel %vm115_vm4, %v105_v32, 2102212464  ;;  %251 = vmatpush.msra.mxu1 %v250_v29  ;;  %426 = vmatpush.msra.mxu2 %v250_v29 }
  0x9f   :  { %v125_v39 = vsel %vm115_vm4, %v111_v34, 1326507024  ;;  %v122_v40 = vsel %vm114_vm5, %v105_v32, %v121_v38  ;;  %v116_v20 = vsel %vm112_vm3, %v96_v9, %v99_v30  ;;  %v118_v21 = vsel %vm114_vm5, %v102_v31, %v117_v5  ;;  %601 = vmatpush.msra.mxu3 %v250_v29  ;;  %v248_v31 = vld [vmem:[#allocation2 + $0x68] sm:$0xff] }
  0xa0   :  { %v126_v41 = vsel %vm114_vm5, %v108_v33, %v125_v39  ;;  %v123_v42 = vsel %vm113_vm6, %v120_v36, %v122_v40  ;;  %v119_v33 = vsel %vm113_vm6, %v116_v20, %v118_v21  ;;  %v249_v36 = vld [vmem:[#allocation2 + $0x70] sm:$0xff]  ;;  %v247_v39 = vld [vmem:[#allocation2 + $0x60] sm:$0xff]  ;;  %v246_v40 = vld [vmem:[#allocation2 + $0x58] sm:$0xff]  ;;  %vm223_vm3 = vweird.f32 %v1142_v2 }
  0xa1   :  { %v127_v43 = vsel %vm113_vm6, %v124_v37, %v126_v41  ;;  %v153_v48 = vand.u32 65535, %v123_v42  ;;  %v154_v49 = vshrl.u32 %v123_v42, 16  ;;  %252 = vmatpush.msra.mxu1 %v249_v36  ;;  %427 = vmatpush.msra.mxu2 %v249_v36  ;;  %v173_v37 = vmul.u32 %v1168_v35, %v119_v33  ;;  %v245_v42 = vld [vmem:[#allocation2 + $0x50] sm:$0xff]  ;;  %v243_v35 = vld [vmem:[#allocation2 + $0x40] sm:$0xff] }
  0xa2   :  { %v131_v46 = vand.u32 65535, %v127_v43  ;;  %v132_v47 = vshrl.u32 %v127_v43, 16  ;;  %602 = vmatpush.msra.mxu3 %v249_v36  ;;  %v244_v43 = vld [vmem:[#allocation2 + $0x48] sm:$0xff] }
  0xa3   :  { %v156_v52 = vmul.u32 %v154_v49, %v129_v44  ;;  %v157_v53 = vmul.u32 %v153_v48, %v130_v45  ;;  %v155_v57 = vmul.u32 %v153_v48, %v129_v44  ;;  %v158_v61 = vmul.u32 %v154_v49, %v130_v45  ;;  %253 = vmatpush.msra.mxu1 %v248_v31  ;;  %v241_v48 = vld [vmem:[#allocation2 + $0x30] sm:$0xff] }
  0xa4   :  { %v134_v50 = vmul.u32 %v132_v47, %v129_v44  ;;  %v135_v51 = vmul.u32 %v131_v46, %v130_v45  ;;  %v133_v54 = vmul.u32 %v131_v46, %v129_v44  ;;  %v136_v56 = vmul.u32 %v132_v47, %v130_v45  ;;  %428 = vmatpush.msra.mxu2 %v248_v31  ;;  %v242_v46 = vld [vmem:[#allocation2 + $0x38] sm:$0xff] }
  0xa5   :  { %v159_v58 = vshll.u32 %v156_v52, 16  ;;  %v161_v0 = vshll.u32 %v157_v53, 16  ;;  %v160_v17 = vshrl.u32 %v156_v52, 16  ;;  %v162_v26 = vshrl.u32 %v157_v53, 16  ;;  %603 = vmatpush.msra.mxu3 %v248_v31  ;;  %254 = vmatpush.msra.mxu1 %v247_v39  ;;  %v239_v53 = vld [vmem:[#allocation2 + $0x20] sm:$0xff] }
  0xa6   :  { %v137_v55 = vshll.u32 %v134_v50, 16  ;;  %v139_v59 = vshll.u32 %v135_v51, 16  ;;  %v138_v10 = vshrl.u32 %v134_v50, 16  ;;  %v140_v23 = vshrl.u32 %v135_v51, 16  ;;  %429 = vmatpush.msra.mxu2 %v247_v39  ;;  %v240_v50 = vld [vmem:[#allocation2 + $0x28] sm:$0xff] }
  0xa7   :  { %vm163_vm8 = vc.u32 %v155_v57, %v159_v58  ;;  %v165_v1 = vadd.s32 %v159_v58, %v155_v57  ;;  %604 = vmatpush.msra.mxu3 %v247_v39  ;;  %255 = vmatpush.msra.mxu1 %v246_v40 }
  0xa8   :  { %vm141_vm7 = vc.u32 %v133_v54, %v137_v55  ;;  %v143_v60 = vadd.s32 %v137_v55, %v133_v54  ;;  %v164_v4 = vsel %vm163_vm8, 1, %v1103_v62  ;;  %430 = vmatpush.msra.mxu2 %v246_v40  ;;  %v238_v55 = vld [vmem:[#allocation2 + $0x18] sm:$0xff] }
  0xa9   :  { %v142_v63 = vsel %vm141_vm7, 1, %v1103_v62  ;;  %v166_v8 = vadd.s32 %v164_v4, %v158_v61  ;;  %vm167_vm10 = vc.u32 %v165_v1, %v161_v0  ;;  %v1205_v11 = vadd.s32 %v165_v1, %v161_v0  ;;  %605 = vmatpush.msra.mxu3 %v246_v40  ;;  %256 = vmatpush.msra.mxu1 %v245_v42  ;;  %v236_v61 = vld [vmem:[#allocation2 + $0x8] sm:$0xff] }
  0xaa   :  { %v144_v3 = vadd.s32 %v142_v63, %v136_v56  ;;  %vm145_vm9 = vc.u32 %v143_v60, %v139_v59  ;;  %v168_v15 = vsel %vm167_vm10, 1, %v1103_v62  ;;  %431 = vmatpush.msra.mxu2 %v245_v42  ;;  %v237_v56 = vld [vmem:[#allocation2 + $0x10] sm:$0xff] }
  0xab   :  { %v146_v7 = vsel %vm145_vm9, 1, %v1103_v62  ;;  %v170_v18 = vadd.s32 %v168_v15, %v166_v8  ;;  %606 = vmatpush.msra.mxu3 %v245_v42  ;;  %257 = vmatpush.msra.mxu1 %v244_v43 }
  0xac   :  { %v148_v12 = vadd.s32 %v146_v7, %v144_v3  ;;  %432 = vmatpush.msra.mxu2 %v244_v43  ;;  %v235_v3 = vld [vmem:[#allocation2] sm:$0xff] }
  0xad   :  { %v171_v27 = vadd.s32 %v170_v18, %v160_v17  ;;  %607 = vmatpush.msra.mxu3 %v244_v43  ;;  %258 = vmatpush.msra.mxu1 %v243_v35 }
  0xae   :  { %v149_v24 = vadd.s32 %v148_v12, %v138_v10  ;;  %433 = vmatpush.msra.mxu2 %v243_v35 }
  0xaf   :  { %v172_v34 = vadd.s32 %v171_v27, %v162_v26  ;;  %608 = vmatpush.msra.mxu3 %v243_v35  ;;  %259 = vmatpush.msra.mxu1 %v242_v46 }
  0xb0   :  { %v1203_v32 = vadd.s32 %v149_v24, %v140_v23  ;;  %434 = vmatpush.msra.mxu2 %v242_v46 }
  0xb1   :  { %v176_v30 = vadd.s32 1, %v172_v34  ;;  %609 = vmatpush.msra.mxu3 %v242_v46  ;;  %260 = vmatpush.msra.mxu1 %v241_v48 }
  0xb2   :  { %vm175_vm11 = vc.u32 %v1203_v32, %v1205_v11  ;;  %435 = vmatpush.msra.mxu2 %v241_v48  ;;  %v174_v58 = vadd.s32 %v1205_v11, %v1203_v32 }
  0xb3   :  { %v177_v38 = vsel %vm175_vm11, %v176_v30, %v172_v34  ;;  %610 = vmatpush.msra.mxu3 %v241_v48  ;;  %261 = vmatpush.msra.mxu1 %v240_v50 }
  0xb4   :  { %v178_v13 = vadd.s32 %v177_v38, %v173_v37  ;;  %436 = vmatpush.msra.mxu2 %v240_v50 }
  0xb5   :  { %611 = vmatpush.msra.mxu3 %v240_v50  ;;  %262 = vmatpush.msra.mxu1 %v239_v53 }
  0xb6   :  { %v179_v41 = vadd.s32 536870912, %v178_v13  ;;  %437 = vmatpush.msra.mxu2 %v239_v53 }
  0xb7   :  { %612 = vmatpush.msra.mxu3 %v239_v53  ;;  %263 = vmatpush.msra.mxu1 %v238_v55 }
  0xb8   :  { %v1212_v44 = vshrl.u32 %v179_v41, 30  ;;  %438 = vmatpush.msra.mxu2 %v238_v55 }
  0xb9   :  { %613 = vmatpush.msra.mxu3 %v238_v55  ;;  %264 = vmatpush.msra.mxu1 %v237_v56 }
  0xba   :  { %v181_v45 = vshll.u32 %v1212_v44, 30  ;;  %439 = vmatpush.msra.mxu2 %v237_v56  ;;  %v204_v18 = vsub.s32 4, %v1212_v44 }
  0xbb   :  { %614 = vmatpush.msra.mxu3 %v237_v56  ;;  %265 = vmatpush.msra.mxu1 %v236_v61 }
  0xbc   :  { %v182_v47 = vsub.s32 %v178_v13, %v181_v45  ;;  %440 = vmatpush.msra.mxu2 %v236_v61  ;;  %v205_v24 = vsel %vm82_vm14, %v204_v18, %v1212_v44 }
  0xbd   :  { %615 = vmatpush.msra.mxu3 %v236_v61  ;;  %266 = vmatpush.msra.mxu1 %v235_v3  ;;  %v207_v29 = vsel %vm81_vm15, 0, %v205_v24 }
  0xbe   :  { %vm183_vm12 = vcmp.lt.s32.totalorder %v182_v47, 0  ;;  %v184_v49 = vsub.s32 0, %v182_v47  ;;  %441 = vmatpush.msra.mxu2 %v235_v3  ;;  %v224_v36 = vadd.s32 3, %v207_v29 }
  0xbf   :  { %616 = vmatpush.msra.mxu3 %v235_v3 }
  0xc0   :  { %v185_v51 = vsel %vm183_vm12, %v184_v49, %v182_v47  ;;  %v225_v38 = vand.u32 3, %v224_v36 }
  0xc1   :  { %v186_v52 = vclz %v185_v51 }
  0xc2   :  { %vm227_vm0 = vcmp.eq.s32.totalorder %v225_v38, 0  ;;  %vm230_vm1 = vcmp.eq.s32.totalorder %v225_v38, 2  ;;  %vm226_vm2 = vcmp.lt.s32.totalorder %v225_v38, 2 }
  0xc3   :  { %v989_v54 = vadd.s32 4294967294, %v186_v52 }
  0xc5   :  { %vm990_vm13 = vcmp.lt.s32.totalorder %v989_v54, 0 }
  0xc6   :  { %v189_v57 = vsel %vm990_vm13, 0, %v989_v54 }
  0xc7   :  { %v190_v59 = vsub.s32 32, %v189_v57  ;;  %v194_v60 = vsub.s32 4294967266, %v189_v57  ;;  %v191_v63 = vshll.u32 %v182_v47, %v189_v57 }
  0xc9   :  { %v192_v0 = vshrl.u32 %v174_v58, %v190_v59  ;;  %v195_v1 = vadd.s32 127, %v194_v60 }
  0xcb   :  { %v193_v4 = vor.u32 %v192_v0, %v191_v63  ;;  %v196_v5 = vshll.u32 %v195_v1, 23 }
  0xcd   :  { %v197_v7 = vor.u32 4788187, %v196_v5  ;;  %v200_v9 = vcvt.s32.f32 %v193_v4 }
  0xcf   :  { %v198_v8 = vand.u32 2147483647, %v197_v7 }
  0xd1   :  { %v201_v10 = vmul.f32 %v200_v9, %v198_v8 }
  0xd3   :  { %v202_v12 = vxor.u32 2147483648, %v201_v10 }
  0xd5   :  { %v203_v15 = vsel %vm82_vm14, %v202_v12, %v201_v10 }
  0xd6   :  { %v206_v17 = vsel %vm81_vm15, %v1142_v2, %v203_v15 }
  0xd7   :  { %v208_v20 = vmul.f32 %v206_v17, %v206_v17 }
  0xd9   :  { %v209_v21 = vmul.f32 -0.001358992, %v208_v20  ;;  %v216_v23 = vmul.f32 -0.00019511016, %v208_v20 }
  0xdb   :  { %v210_v26 = vadd.f32 0.041655596, %v209_v21  ;;  %v217_v27 = vadd.f32 0.008332121, %v216_v23 }
  0xdd   :  { %v211_v32 = vmul.f32 %v210_v26, %v208_v20  ;;  %v218_v11 = vmul.f32 %v217_v27, %v208_v20 }
  0xdf   :  { %v212_v33 = vadd.f32 -0.4999988, %v211_v32  ;;  %v219_v34 = vadd.f32 -0.16666654, %v218_v11 }
  0xe1   :  { %v213_v30 = vmul.f32 %v212_v33, %v208_v20  ;;  %v220_v6 = vmul.f32 %v219_v34, %v208_v20 }
  0xe3   :  { %v214_v31 = vadd.f32 1.0, %v213_v30  ;;  %v221_v37 = vadd.f32 1.0, %v220_v6 }
  0xe5   :  { %v222_v39 = vmul.f32 %v221_v37, %v206_v17  ;;  %v231_v13 = vxor.u32 2147483648, %v214_v31 }
  0xe7   :  { %v228_v40 = vxor.u32 2147483648, %v222_v39  ;;  %v232_v42 = vsel %vm230_vm1, %v231_v13, %v222_v39 }
  0xe9   :  { %v229_v41 = vsel %vm227_vm0, %v214_v31, %v228_v40 }
  0xea   :  { %v233_v43 = vsel %vm226_vm2, %v229_v41, %v232_v42 }
  0xeb   :  { %v234_v44 = vsel %vm223_vm3, nan, %v233_v43 }
  0xec   :  { %267 = vmatmul.f32.vlgmr.msra.gmra.mxu1 %v234_v44 }
 0x169   :  { %v1224_v35 = vpop.f32.mrf.mxu1 }
 0x16a   :  { %v274_v45 = vand.u32 2139095040, %v1224_v35  ;;  %v271_v48 = vand.u32 2147483647, %v1224_v35  ;;  %vm273_vm0 = vcmp.lt.s32.totalorder %v1224_v35, 0 }
 0x16c   :  { %v275_v46 = vshrl.u32 %v274_v45, 23  ;;  %v278_v50 = vand.u32 8388607, %v271_v48  ;;  %vm272_vm1 = vcmp.le.f32.partialorder %v271_v48, 0.7853982 }
 0x16e   :  { %v991_v47 = vadd.s32 4294967169, %v275_v46  ;;  %v279_v2 = vor.u32 8388608, %v278_v50 }
 0x170   :  { %v281_v49 = vadd.s32 1, %v991_v47  ;;  %v1243_v9 = vshll.u32 %v279_v2, 8 }
 0x172   :  { %vm282_vm4 = vcmp.gt.s32.totalorder %v281_v49, 0  ;;  %v320_v24 = vand.u32 65535, %v1243_v9  ;;  %v321_v26 = vshrl.u32 %v1243_v9, 16 }
 0x173   :  { %v283_v51 = vsel %vm282_vm4, %v281_v49, 0 }
 0x174   :  { %v285_v52 = vand.u32 31, %v283_v51  ;;  %v1230_v54 = vshrl.u32 %v283_v51, 5 }
 0x176   :  { %v286_v53 = vsub.s32 32, %v285_v52  ;;  %v288_v55 = vshll.u32 %v1097_v14, %v285_v52  ;;  %v291_v56 = vshll.u32 %v1098_v16, %v285_v52  ;;  %v294_v59 = vshll.u32 %v1099_v19, %v285_v52 }
 0x177   :  { %v297_v61 = vshll.u32 %v1100_v22, %v285_v52  ;;  %v300_v0 = vshll.u32 %v1101_v25, %v285_v52  ;;  %vm303_vm5 = vcmp.lt.s32.totalorder %v1230_v54, 1  ;;  %vm306_vm6 = vcmp.lt.s32.totalorder %v1230_v54, 4 }
 0x178   :  { %v289_v57 = vshrl.u32 %v1098_v16, %v286_v53  ;;  %v292_v58 = vshrl.u32 %v1099_v19, %v286_v53  ;;  %v295_v60 = vshrl.u32 %v1100_v22, %v286_v53  ;;  %v298_v63 = vshrl.u32 %v1101_v25, %v286_v53 }
 0x179   :  { %v301_v1 = vshrl.u32 %v1102_v28, %v286_v53  ;;  %vm305_vm7 = vcmp.lt.s32.totalorder %v1230_v54, 3  ;;  %vm304_vm8 = vcmp.lt.s32.totalorder %v1230_v54, 2  ;;  %v287_v51 = vshrl.u32 %v1097_v14, %v286_v53 }
 0x17a   :  { %v290_v3 = vor.u32 %v289_v57, %v288_v55  ;;  %v293_v4 = vor.u32 %v292_v58, %v291_v56  ;;  %v296_v5 = vor.u32 %v295_v60, %v294_v59  ;;  %v299_v7 = vor.u32 %v298_v63, %v297_v61 }
 0x17b   :  { %v302_v8 = vor.u32 %v301_v1, %v300_v0 }
 0x17c   :  { %v311_v10 = vsel %vm303_vm5, %v290_v3, %v293_v4  ;;  %v315_v12 = vsel %vm303_vm5, %v293_v4, %v296_v5  ;;  %v312_v15 = vsel %vm306_vm6, %v299_v7, 920167782  ;;  %v308_v47 = vsel %vm306_vm6, %v296_v5, 2102212464 }
 0x17d   :  { %v316_v17 = vsel %vm306_vm6, %v302_v8, 1326507024  ;;  %v313_v18 = vsel %vm305_vm7, %v296_v5, %v312_v15  ;;  %v307_v58 = vsel %vm303_vm5, %v287_v51, %v290_v3  ;;  %v309_v59 = vsel %vm305_vm7, %v293_v4, %v308_v47 }
 0x17e   :  { %v317_v20 = vsel %vm305_vm7, %v299_v7, %v316_v17  ;;  %v314_v21 = vsel %vm304_vm8, %v311_v10, %v313_v18  ;;  %v310_v53 = vsel %vm304_vm8, %v307_v58, %v309_v59  ;;  %vm414_vm5 = vweird.f32 %v1224_v35 }
 0x17f   :  { %v318_v23 = vsel %vm304_vm8, %v315_v12, %v317_v20  ;;  %v344_v32 = vand.u32 65535, %v314_v21  ;;  %v345_v11 = vshrl.u32 %v314_v21, 16  ;;  %v364_v10 = vmul.u32 %v1243_v9, %v310_v53 }
 0x180   :  { %v322_v27 = vand.u32 65535, %v318_v23  ;;  %v323_v29 = vshrl.u32 %v318_v23, 16 }
 0x181   :  { %v347_v36 = vmul.u32 %v345_v11, %v320_v24  ;;  %v348_v30 = vmul.u32 %v344_v32, %v321_v26  ;;  %v346_v38 = vmul.u32 %v344_v32, %v320_v24  ;;  %v349_v41 = vmul.u32 %v345_v11, %v321_v26 }
 0x182   :  { %v325_v33 = vmul.u32 %v323_v29, %v320_v24  ;;  %v326_v34 = vmul.u32 %v322_v27, %v321_v26  ;;  %v324_v6 = vmul.u32 %v322_v27, %v320_v24  ;;  %v327_v37 = vmul.u32 %v323_v29, %v321_v26 }
 0x183   :  { %v350_v39 = vshll.u32 %v347_v36, 16  ;;  %v352_v43 = vshll.u32 %v348_v30, 16  ;;  %v351_v56 = vshrl.u32 %v347_v36, 16  ;;  %v353_v63 = vshrl.u32 %v348_v30, 16 }
 0x184   :  { %v328_v31 = vshll.u32 %v325_v33, 16  ;;  %v330_v13 = vshll.u32 %v326_v34, 16  ;;  %v329_v52 = vshrl.u32 %v325_v33, 16  ;;  %v331_v60 = vshrl.u32 %v326_v34, 16 }
 0x185   :  { %vm354_vm10 = vc.u32 %v346_v38, %v350_v39  ;;  %v356_v44 = vadd.s32 %v350_v39, %v346_v38 }
 0x186   :  { %vm332_vm9 = vc.u32 %v324_v6, %v328_v31  ;;  %v334_v40 = vadd.s32 %v328_v31, %v324_v6  ;;  %v355_v46 = vsel %vm354_vm10, 1, %v1103_v62 }
 0x187   :  { %v333_v42 = vsel %vm332_vm9, 1, %v1103_v62  ;;  %v357_v50 = vadd.s32 %v355_v46, %v349_v41  ;;  %vm358_vm12 = vc.u32 %v356_v44, %v352_v43  ;;  %v360_v5 = vadd.s32 %v356_v44, %v352_v43 }
 0x188   :  { %v335_v45 = vadd.s32 %v333_v42, %v327_v37  ;;  %vm336_vm11 = vc.u32 %v334_v40, %v330_v13  ;;  %v359_v55 = vsel %vm358_vm12, 1, %v1103_v62 }
 0x189   :  { %v337_v49 = vsel %vm336_vm11, 1, %v1103_v62  ;;  %v361_v57 = vadd.s32 %v359_v55, %v357_v50 }
 0x18a   :  { %v339_v2 = vadd.s32 %v337_v49, %v335_v45 }
 0x18b   :  { %v362_v0 = vadd.s32 %v361_v57, %v351_v56 }
 0x18c   :  { %v340_v61 = vadd.s32 %v339_v2, %v329_v52 }
 0x18d   :  { %v363_v7 = vadd.s32 %v362_v0, %v353_v63 }
 0x18e   :  { %v341_v1 = vadd.s32 %v340_v61, %v331_v60 }
 0x18f   :  { %v367_v8 = vadd.s32 1, %v363_v7 }
 0x190   :  { %vm366_vm13 = vc.u32 %v341_v1, %v360_v5  ;;  %v365_v54 = vadd.s32 %v360_v5, %v341_v1 }
 0x191   :  { %v368_v12 = vsel %vm366_vm13, %v367_v8, %v363_v7 }
 0x192   :  { %v369_v15 = vadd.s32 %v368_v12, %v364_v10 }
 0x194   :  { %v370_v3 = vadd.s32 536870912, %v369_v15 }
 0x196   :  { %v371_v17 = vshrl.u32 %v370_v3, 30 }
 0x198   :  { %v372_v18 = vshll.u32 %v371_v17, 30  ;;  %v395_v39 = vsub.s32 4, %v371_v17 }
 0x19a   :  { %v373_v4 = vsub.s32 %v369_v15, %v372_v18  ;;  %v396_v43 = vsel %vm273_vm0, %v395_v39, %v371_v17 }
 0x19b   :  { %v398_v46 = vsel %vm272_vm1, 0, %v396_v43 }
 0x19c   :  { %vm374_vm14 = vcmp.lt.s32.totalorder %v373_v4, 0  ;;  %v375_v20 = vsub.s32 0, %v373_v4  ;;  %v415_v52 = vadd.s32 3, %v398_v46 }
 0x19e   :  { %v376_v21 = vsel %vm374_vm14, %v375_v20, %v373_v4  ;;  %v416_v57 = vand.u32 3, %v415_v52 }
 0x19f   :  { %v377_v23 = vclz %v376_v21 }
 0x1a0   :  { %vm418_vm2 = vcmp.eq.s32.totalorder %v416_v57, 0  ;;  %vm421_vm3 = vcmp.eq.s32.totalorder %v416_v57, 2  ;;  %vm417_vm4 = vcmp.lt.s32.totalorder %v416_v57, 2 }
 0x1a1   :  { %v992_v24 = vadd.s32 4294967294, %v377_v23 }
 0x1a3   :  { %vm993_vm15 = vcmp.lt.s32.totalorder %v992_v24, 0 }
 0x1a4   :  { %v380_v26 = vsel %vm993_vm15, 0, %v992_v24 }
 0x1a5   :  { %v381_v27 = vsub.s32 32, %v380_v26  ;;  %v385_v29 = vsub.s32 4294967266, %v380_v26  ;;  %v382_v32 = vshll.u32 %v373_v4, %v380_v26 }
 0x1a7   :  { %v383_v11 = vshrl.u32 %v365_v54, %v381_v27  ;;  %v386_v33 = vadd.s32 127, %v385_v29 }
 0x1a9   :  { %v384_v9 = vor.u32 %v383_v11, %v382_v32  ;;  %v387_v34 = vshll.u32 %v386_v33, 23 }
 0x1ab   :  { %v388_v36 = vor.u32 4788187, %v387_v34  ;;  %v391_v6 = vcvt.s32.f32 %v384_v9 }
 0x1ad   :  { %v389_v30 = vand.u32 2147483647, %v388_v36 }
 0x1af   :  { %v392_v31 = vmul.f32 %v391_v6, %v389_v30 }
 0x1b1   :  { %v393_v37 = vxor.u32 2147483648, %v392_v31 }
 0x1b3   :  { %v394_v38 = vsel %vm273_vm0, %v393_v37, %v392_v31 }
 0x1b4   :  { %v397_v13 = vsel %vm272_vm1, %v1224_v35, %v394_v38 }
 0x1b5   :  { %v399_v40 = vmul.f32 %v397_v13, %v397_v13 }
 0x1b7   :  { %v407_v41 = vmul.f32 -0.00019511016, %v399_v40  ;;  %v400_v42 = vmul.f32 -0.001358992, %v399_v40 }
 0x1b9   :  { %v408_v44 = vadd.f32 0.008332121, %v407_v41  ;;  %v401_v45 = vadd.f32 0.041655596, %v400_v42 }
 0x1bb   :  { %v409_v47 = vmul.f32 %v408_v44, %v399_v40  ;;  %v402_v49 = vmul.f32 %v401_v45, %v399_v40 }
 0x1bd   :  { %v410_v50 = vadd.f32 -0.16666654, %v409_v47  ;;  %v403_v51 = vadd.f32 -0.4999988, %v402_v49 }
 0x1bf   :  { %v411_v2 = vmul.f32 %v410_v50, %v399_v40  ;;  %v404_v55 = vmul.f32 %v403_v51, %v399_v40 }
 0x1c1   :  { %v412_v56 = vadd.f32 1.0, %v411_v2  ;;  %v405_v48 = vadd.f32 1.0, %v404_v55 }
 0x1c3   :  { %v413_v58 = vmul.f32 %v412_v56, %v397_v13  ;;  %v422_v59 = vxor.u32 2147483648, %v405_v48 }
 0x1c5   :  { %v419_v60 = vxor.u32 2147483648, %v413_v58  ;;  %v423_v63 = vsel %vm421_vm3, %v422_v59, %v413_v58 }
 0x1c7   :  { %v420_v61 = vsel %vm418_vm2, %v405_v48, %v419_v60 }
 0x1c8   :  { %v424_v0 = vsel %vm417_vm4, %v420_v61, %v423_v63 }
 0x1c9   :  { %v425_v1 = vsel %vm414_vm5, nan, %v424_v0 }
 0x1ca   :  { %442 = vmatmul.f32.vlgmr.msra.gmra.mxu2 %v425_v1 }
 0x24d   :  { %v1285_v5 = vpop.f32.mrf.mxu2 }
 0x24e   :  { %v449_v53 = vand.u32 2139095040, %v1285_v5  ;;  %v446_v10 = vand.u32 2147483647, %v1285_v5  ;;  %vm448_vm2 = vcmp.lt.s32.totalorder %v1285_v5, 0 }
 0x250   :  { %v450_v7 = vshrl.u32 %v449_v53, 23  ;;  %v453_v15 = vand.u32 8388607, %v446_v10  ;;  %vm447_vm3 = vcmp.le.f32.partialorder %v446_v10, 0.7853982 }
 0x252   :  { %v994_v8 = vadd.s32 4294967169, %v450_v7  ;;  %v454_v35 = vor.u32 8388608, %v453_v15 }
 0x254   :  { %v456_v12 = vadd.s32 1, %v994_v8  ;;  %v1304_v6 = vshll.u32 %v454_v35, 8 }
 0x256   :  { %vm457_vm6 = vcmp.gt.s32.totalorder %v456_v12, 0  ;;  %v495_v43 = vand.u32 65535, %v1304_v6  ;;  %v496_v44 = vshrl.u32 %v1304_v6, 16 }
 0x257   :  { %v458_v3 = vsel %vm457_vm6, %v456_v12, 0 }
 0x258   :  { %v460_v17 = vand.u32 31, %v458_v3  ;;  %v1291_v4 = vshrl.u32 %v458_v3, 5 }
 0x25a   :  { %v461_v18 = vsub.s32 32, %v460_v17  ;;  %v463_v20 = vshll.u32 %v1097_v14, %v460_v17  ;;  %v466_v21 = vshll.u32 %v1098_v16, %v460_v17  ;;  %v469_v26 = vshll.u32 %v1099_v19, %v460_v17 }
 0x25b   :  { %v472_v27 = vshll.u32 %v1100_v22, %v460_v17  ;;  %v475_v32 = vshll.u32 %v1101_v25, %v460_v17  ;;  %vm478_vm7 = vcmp.lt.s32.totalorder %v1291_v4, 1  ;;  %vm481_vm8 = vcmp.lt.s32.totalorder %v1291_v4, 4 }
 0x25c   :  { %v464_v23 = vshrl.u32 %v1098_v16, %v461_v18  ;;  %v467_v24 = vshrl.u32 %v1099_v19, %v461_v18  ;;  %v470_v54 = vshrl.u32 %v1100_v22, %v461_v18  ;;  %v473_v29 = vshrl.u32 %v1101_v25, %v461_v18 }
 0x25d   :  { %v476_v11 = vshrl.u32 %v1102_v28, %v461_v18  ;;  %vm480_vm9 = vcmp.lt.s32.totalorder %v1291_v4, 3  ;;  %vm479_vm10 = vcmp.lt.s32.totalorder %v1291_v4, 2  ;;  %v462_v3 = vshrl.u32 %v1097_v14, %v461_v18 }
 0x25e   :  { %v465_v33 = vor.u32 %v464_v23, %v463_v20  ;;  %v468_v9 = vor.u32 %v467_v24, %v466_v21  ;;  %v471_v34 = vor.u32 %v470_v54, %v469_v26  ;;  %v474_v36 = vor.u32 %v473_v29, %v472_v27 }
 0x25f   :  { %v477_v30 = vor.u32 %v476_v11, %v475_v32 }
 0x260   :  { %v486_v31 = vsel %vm478_vm7, %v465_v33, %v468_v9  ;;  %v490_v37 = vsel %vm478_vm7, %v468_v9, %v471_v34  ;;  %v487_v38 = vsel %vm481_vm8, %v474_v36, 920167782  ;;  %v483_v8 = vsel %vm481_vm8, %v471_v34, 2102212464 }
 0x261   :  { %v491_v39 = vsel %vm481_vm8, %v477_v30, 1326507024  ;;  %v488_v13 = vsel %vm480_vm9, %v471_v34, %v487_v38  ;;  %v482_v24 = vsel %vm478_vm7, %v462_v3, %v465_v33  ;;  %v484_v26 = vsel %vm480_vm9, %v468_v9, %v483_v8 }
 0x262   :  { %v492_v40 = vsel %vm480_vm9, %v474_v36, %v491_v39  ;;  %v489_v41 = vsel %vm479_vm10, %v486_v31, %v488_v13  ;;  %v485_v18 = vsel %vm479_vm10, %v482_v24, %v484_v26  ;;  %vm589_vm7 = vweird.f32 %v1285_v5 }
 0x263   :  { %v493_v42 = vsel %vm479_vm10, %v490_v37, %v492_v40  ;;  %v519_v47 = vand.u32 65535, %v489_v41  ;;  %v520_v49 = vshrl.u32 %v489_v41, 16  ;;  %v539_v31 = vmul.u32 %v1304_v6, %v485_v18 }
 0x264   :  { %v497_v45 = vand.u32 65535, %v493_v42  ;;  %v498_v46 = vshrl.u32 %v493_v42, 16 }
 0x265   :  { %v522_v52 = vmul.u32 %v520_v49, %v495_v43  ;;  %v523_v2 = vmul.u32 %v519_v47, %v496_v44  ;;  %v521_v57 = vmul.u32 %v519_v47, %v495_v43  ;;  %v524_v61 = vmul.u32 %v520_v49, %v496_v44 }
 0x266   :  { %v500_v50 = vmul.u32 %v498_v46, %v495_v43  ;;  %v501_v51 = vmul.u32 %v497_v45, %v496_v44  ;;  %v499_v55 = vmul.u32 %v497_v45, %v495_v43  ;;  %v502_v48 = vmul.u32 %v498_v46, %v496_v44 }
 0x267   :  { %v525_v58 = vshll.u32 %v522_v52, 16  ;;  %v527_v0 = vshll.u32 %v523_v2, 16  ;;  %v526_v21 = vshrl.u32 %v522_v52, 16  ;;  %v528_v29 = vshrl.u32 %v523_v2, 16 }
 0x268   :  { %v503_v56 = vshll.u32 %v500_v50, 16  ;;  %v505_v59 = vshll.u32 %v501_v51, 16  ;;  %v504_v17 = vshrl.u32 %v500_v50, 16  ;;  %v506_v54 = vshrl.u32 %v501_v51, 16 }
 0x269   :  { %vm529_vm12 = vc.u32 %v521_v57, %v525_v58  ;;  %v531_v1 = vadd.s32 %v525_v58, %v521_v57 }
 0x26a   :  { %vm507_vm11 = vc.u32 %v499_v55, %v503_v56  ;;  %v509_v60 = vadd.s32 %v503_v56, %v499_v55  ;;  %v530_v7 = vsel %vm529_vm12, 1, %v1103_v62 }
 0x26b   :  { %v508_v63 = vsel %vm507_vm11, 1, %v1103_v62  ;;  %v532_v15 = vadd.s32 %v530_v7, %v524_v61  ;;  %vm533_vm14 = vc.u32 %v531_v1, %v527_v0  ;;  %v535_v34 = vadd.s32 %v531_v1, %v527_v0 }
 0x26c   :  { %v510_v53 = vadd.s32 %v508_v63, %v502_v48  ;;  %vm511_vm13 = vc.u32 %v509_v60, %v505_v59  ;;  %v534_v20 = vsel %vm533_vm14, 1, %v1103_v62 }
 0x26d   :  { %v512_v12 = vsel %vm511_vm13, 1, %v1103_v62  ;;  %v536_v23 = vadd.s32 %v534_v20, %v532_v15 }
 0x26e   :  { %v514_v35 = vadd.s32 %v512_v12, %v510_v53 }
 0x26f   :  { %v537_v32 = vadd.s32 %v536_v23, %v526_v21 }
 0x270   :  { %v515_v27 = vadd.s32 %v514_v35, %v504_v17 }
 0x271   :  { %v538_v36 = vadd.s32 %v537_v32, %v528_v29 }
 0x272   :  { %v516_v11 = vadd.s32 %v515_v27, %v506_v54 }
 0x273   :  { %v542_v30 = vadd.s32 1, %v538_v36 }
 0x274   :  { %vm541_vm15 = vc.u32 %v516_v11, %v535_v34  ;;  %v540_v4 = vadd.s32 %v535_v34, %v516_v11 }
 0x275   :  { %v543_v37 = vsel %vm541_vm15, %v542_v30, %v538_v36 }
 0x276   :  { %v544_v38 = vadd.s32 %v543_v37, %v539_v31 }
 0x278   :  { %v545_v33 = vadd.s32 536870912, %v544_v38 }
 0x27a   :  { %v546_v39 = vshrl.u32 %v545_v33, 30 }
 0x27c   :  { %v547_v13 = vshll.u32 %v546_v39, 30  ;;  %v570_v58 = vsub.s32 4, %v546_v39 }
 0x27e   :  { %v548_v9 = vsub.s32 %v544_v38, %v547_v13  ;;  %v571_v0 = vsel %vm448_vm2, %v570_v58, %v546_v39 }
 0x27f   :  { %v573_v7 = vsel %vm447_vm3, 0, %v571_v0 }
 0x280   :  { %vm549_vm0 = vcmp.lt.s32.totalorder %v548_v9, 0  ;;  %v550_v40 = vsub.s32 0, %v548_v9  ;;  %v590_v17 = vadd.s32 3, %v573_v7 }
 0x282   :  { %v551_v41 = vsel %vm549_vm0, %v550_v40, %v548_v9  ;;  %v591_v23 = vand.u32 3, %v590_v17 }
 0x283   :  { %v552_v42 = vclz %v551_v41 }
 0x284   :  { %vm593_vm4 = vcmp.eq.s32.totalorder %v591_v23, 0  ;;  %vm596_vm5 = vcmp.eq.s32.totalorder %v591_v23, 2  ;;  %vm592_vm6 = vcmp.lt.s32.totalorder %v591_v23, 2 }
 0x285   :  { %v995_v43 = vadd.s32 4294967294, %v552_v42 }
 0x287   :  { %vm996_vm1 = vcmp.lt.s32.totalorder %v995_v43, 0 }
 0x288   :  { %v555_v44 = vsel %vm996_vm1, 0, %v995_v43 }
 0x289   :  { %v556_v45 = vsub.s32 32, %v555_v44  ;;  %v560_v46 = vsub.s32 4294967266, %v555_v44  ;;  %v557_v47 = vshll.u32 %v548_v9, %v555_v44 }
 0x28b   :  { %v558_v49 = vshrl.u32 %v540_v4, %v556_v45  ;;  %v561_v50 = vadd.s32 127, %v560_v46 }
 0x28d   :  { %v559_v6 = vor.u32 %v558_v49, %v557_v47  ;;  %v562_v51 = vshll.u32 %v561_v50, 23 }
 0x28f   :  { %v563_v52 = vor.u32 4788187, %v562_v51  ;;  %v566_v55 = vcvt.s32.f32 %v559_v6 }
 0x291   :  { %v564_v2 = vand.u32 2147483647, %v563_v52 }
 0x293   :  { %v567_v56 = vmul.f32 %v566_v55, %v564_v2 }
 0x295   :  { %v568_v48 = vxor.u32 2147483648, %v567_v56 }
 0x297   :  { %v569_v57 = vsel %vm448_vm2, %v568_v48, %v567_v56 }
 0x298   :  { %v572_v59 = vsel %vm447_vm3, %v1285_v5, %v569_v57 }
 0x299   :  { %v574_v60 = vmul.f32 %v572_v59, %v572_v59 }
 0x29b   :  { %v582_v61 = vmul.f32 -0.00019511016, %v574_v60  ;;  %v575_v63 = vmul.f32 -0.001358992, %v574_v60 }
 0x29d   :  { %v583_v1 = vadd.f32 0.008332121, %v582_v61  ;;  %v576_v53 = vadd.f32 0.041655596, %v575_v63 }
 0x29f   :  { %v584_v8 = vmul.f32 %v583_v1, %v574_v60  ;;  %v577_v12 = vmul.f32 %v576_v53, %v574_v60 }
 0x2a1   :  { %v585_v15 = vadd.f32 -0.16666654, %v584_v8  ;;  %v578_v3 = vadd.f32 -0.4999988, %v577_v12 }
 0x2a3   :  { %v586_v35 = vmul.f32 %v585_v15, %v574_v60  ;;  %v579_v20 = vmul.f32 %v578_v3, %v574_v60 }
 0x2a5   :  { %v587_v21 = vadd.f32 1.0, %v586_v35  ;;  %v580_v10 = vadd.f32 1.0, %v579_v20 }
 0x2a7   :  { %v588_v24 = vmul.f32 %v587_v21, %v572_v59  ;;  %v597_v26 = vxor.u32 2147483648, %v580_v10 }
 0x2a9   :  { %v594_v54 = vxor.u32 2147483648, %v588_v24  ;;  %v598_v29 = vsel %vm596_vm5, %v597_v26, %v588_v24 }
 0x2ab   :  { %v595_v27 = vsel %vm593_vm4, %v580_v10, %v594_v54 }
 0x2ac   :  { %v599_v32 = vsel %vm592_vm6, %v595_v27, %v598_v29 }
 0x2ad   :  { %v600_v11 = vsel %vm589_vm7, nan, %v599_v32 }
 0x2ae   :  { %617 = vmatmul.f32.vlgmr.msra.gmra.mxu3 %v600_v11 }
 0x331   :  { %v1346_v34 = vpop.f32.mrf.mxu3 }
 0x332   :  { %v624_v18 = vand.u32 2139095040, %v1346_v34  ;;  %v621_v31 = vand.u32 2147483647, %v1346_v34  ;;  %vm623_vm4 = vcmp.lt.s32.totalorder %v1346_v34, 0 }
 0x334   :  { %v625_v36 = vshrl.u32 %v624_v18, 23  ;;  %v628_v38 = vand.u32 8388607, %v621_v31  ;;  %vm622_vm5 = vcmp.le.f32.partialorder %v621_v31, 0.7853982 }
 0x336   :  { %v997_v30 = vadd.s32 4294967169, %v625_v36  ;;  %v629_v5 = vor.u32 8388608, %v628_v38 }
 0x338   :  { %v631_v37 = vadd.s32 1, %v997_v30  ;;  %v1365_v55 = vshll.u32 %v629_v5, 8 }
 0x33a   :  { %vm632_vm8 = vcmp.gt.s32.totalorder %v631_v37, 0  ;;  %v670_v0 = vand.u32 65535, %v1365_v55  ;;  %v671_v1 = vshrl.u32 %v1365_v55, 16 }
 0x33b   :  { %v633_v33 = vsel %vm632_vm8, %v631_v37, 0 }
 0x33c   :  { %v635_v39 = vand.u32 31, %v633_v33  ;;  %v1352_v9 = vshrl.u32 %v633_v33, 5 }
 0x33e   :  { %v636_v13 = vsub.s32 32, %v635_v39  ;;  %v638_v40 = vshll.u32 %v1097_v14, %v635_v39  ;;  %v641_v41 = vshll.u32 %v1098_v16, %v635_v39  ;;  %v644_v44 = vshll.u32 %v1099_v19, %v635_v39 }
 0x33f   :  { %v647_v45 = vshll.u32 %v1100_v22, %v635_v39  ;;  %v650_v47 = vshll.u32 %v1101_v25, %v635_v39  ;;  %vm653_vm9 = vcmp.lt.s32.totalorder %v1352_v9, 1  ;;  %vm656_vm10 = vcmp.lt.s32.totalorder %v1352_v9, 4 }
 0x340   :  { %v639_v42 = vshrl.u32 %v1098_v16, %v636_v13  ;;  %v642_v43 = vshrl.u32 %v1099_v19, %v636_v13  ;;  %v645_v4 = vshrl.u32 %v1100_v22, %v636_v13  ;;  %v648_v46 = vshrl.u32 %v1101_v25, %v636_v13 }
 0x341   :  { %v651_v49 = vshrl.u32 %v1102_v28, %v636_v13  ;;  %vm655_vm11 = vcmp.lt.s32.totalorder %v1352_v9, 3  ;;  %vm654_vm12 = vcmp.lt.s32.totalorder %v1352_v9, 2  ;;  %v637_v33 = vshrl.u32 %v1097_v14, %v636_v13  ;;  %v785_v9 = vld [vmem:[#allocation5 + $0x48] sm:$0xff] }
 0x342   :  { %v640_v50 = vor.u32 %v639_v42, %v638_v40  ;;  %v643_v6 = vor.u32 %v642_v43, %v641_v41  ;;  %v646_v51 = vor.u32 %v645_v4, %v644_v44  ;;  %v649_v52 = vor.u32 %v648_v46, %v647_v45 }
 0x343   :  { %v652_v2 = vor.u32 %v651_v49, %v650_v47  ;;  %v791_v49 = vld [vmem:[#allocation5 + $0x78] sm:$0xff] }
 0x344   :  { %v661_v56 = vsel %vm653_vm9, %v640_v50, %v643_v6  ;;  %v665_v48 = vsel %vm653_vm9, %v643_v6, %v646_v51  ;;  %v662_v57 = vsel %vm656_vm10, %v649_v52, 920167782  ;;  %v658_v30 = vsel %vm656_vm10, %v646_v51, 2102212464  ;;  %792 = vmatpush.msrb.mxu0 %v791_v49 }
 0x345   :  { %v666_v58 = vsel %vm656_vm10, %v652_v2, 1326507024  ;;  %v663_v59 = vsel %vm655_vm11, %v646_v51, %v662_v57  ;;  %v657_v43 = vsel %vm653_vm9, %v637_v33, %v640_v50  ;;  %v659_v44 = vsel %vm655_vm11, %v643_v6, %v658_v30  ;;  %v789_v50 = vld [vmem:[#allocation5 + $0x68] sm:$0xff] }
 0x346   :  { %v667_v60 = vsel %vm655_vm11, %v649_v52, %v666_v58  ;;  %v664_v61 = vsel %vm654_vm12, %v661_v56, %v663_v59  ;;  %v660_v13 = vsel %vm654_vm12, %v657_v43, %v659_v44  ;;  %v790_v56 = vld [vmem:[#allocation5 + $0x70] sm:$0xff]  ;;  %v788_v58 = vld [vmem:[#allocation5 + $0x60] sm:$0xff]  ;;  %vm764_vm9 = vweird.f32 %v1346_v34 }
 0x347   :  { %v668_v63 = vsel %vm654_vm12, %v665_v48, %v667_v60  ;;  %v694_v8 = vand.u32 65535, %v664_v61  ;;  %v695_v12 = vshrl.u32 %v664_v61, 16  ;;  %793 = vmatpush.msrb.mxu0 %v790_v56  ;;  %v714_v57 = vmul.u32 %v1365_v55, %v660_v13  ;;  %v787_v60 = vld [vmem:[#allocation5 + $0x58] sm:$0xff] }
 0x348   :  { %v672_v53 = vand.u32 65535, %v668_v63  ;;  %v673_v7 = vshrl.u32 %v668_v63, 16  ;;  %v786_v63 = vld [vmem:[#allocation5 + $0x50] sm:$0xff] }
 0x349   :  { %v697_v17 = vmul.u32 %v695_v12, %v670_v0  ;;  %v698_v35 = vmul.u32 %v694_v8, %v671_v1  ;;  %v696_v23 = vmul.u32 %v694_v8, %v670_v0  ;;  %v699_v27 = vmul.u32 %v695_v12, %v671_v1  ;;  %794 = vmatpush.msrb.mxu0 %v789_v50  ;;  %v783_v8 = vld [vmem:[#allocation5 + $0x38] sm:$0xff]  ;;  %v782_v12 = vld [vmem:[#allocation5 + $0x30] sm:$0xff] }
 0x34a   :  { %v675_v15 = vmul.u32 %v673_v7, %v670_v0  ;;  %v676_v3 = vmul.u32 %v672_v53, %v671_v1  ;;  %v674_v20 = vmul.u32 %v672_v53, %v670_v0  ;;  %v677_v10 = vmul.u32 %v673_v7, %v671_v1  ;;  %v784_v53 = vld [vmem:[#allocation5 + $0x40] sm:$0xff] }
 0x34b   :  { %v700_v24 = vshll.u32 %v697_v17, 16  ;;  %v702_v32 = vshll.u32 %v698_v35, 16  ;;  %v701_v41 = vshrl.u32 %v697_v17, 16  ;;  %v703_v46 = vshrl.u32 %v698_v35, 16  ;;  %795 = vmatpush.msrb.mxu0 %v788_v58  ;;  %v781_v17 = vld [vmem:[#allocation5 + $0x28] sm:$0xff] }
 0x34c   :  { %v678_v21 = vshll.u32 %v675_v15, 16  ;;  %v680_v26 = vshll.u32 %v676_v3, 16  ;;  %v679_v39 = vshrl.u32 %v675_v15, 16  ;;  %v681_v4 = vshrl.u32 %v676_v3, 16 }
 0x34d   :  { %vm704_vm14 = vc.u32 %v696_v23, %v700_v24  ;;  %v706_v11 = vadd.s32 %v700_v24, %v696_v23  ;;  %796 = vmatpush.msrb.mxu0 %v787_v60 }
 0x34e   :  { %vm682_vm13 = vc.u32 %v674_v20, %v678_v21  ;;  %v684_v54 = vadd.s32 %v678_v21, %v674_v20  ;;  %v705_v36 = vsel %vm704_vm14, 1, %v1103_v62  ;;  %v780_v20 = vld [vmem:[#allocation5 + $0x20] sm:$0xff]  ;;  %v779_v21 = vld [vmem:[#allocation5 + $0x18] sm:$0xff] }
 0x34f   :  { %v683_v29 = vsel %vm682_vm13, 1, %v1103_v62  ;;  %v707_v38 = vadd.s32 %v705_v36, %v699_v27  ;;  %vm708_vm0 = vc.u32 %v706_v11, %v702_v32  ;;  %v710_v52 = vadd.s32 %v706_v11, %v702_v32  ;;  %797 = vmatpush.msrb.mxu0 %v786_v63  ;;  %v777_v27 = vld [vmem:[#allocation5 + $0x8] sm:$0xff] }
 0x350   :  { %v685_v18 = vadd.s32 %v683_v29, %v677_v10  ;;  %vm686_vm15 = vc.u32 %v684_v54, %v680_v26  ;;  %v709_v40 = vsel %vm708_vm0, 1, %v1103_v62  ;;  %v778_v54 = vld [vmem:[#allocation5 + $0x10] sm:$0xff] }
 0x351   :  { %v687_v37 = vsel %vm686_vm15, 1, %v1103_v62  ;;  %v711_v42 = vadd.s32 %v709_v40, %v707_v38  ;;  %798 = vmatpush.msrb.mxu0 %v785_v9 }
 0x352   :  { %v689_v5 = vadd.s32 %v687_v37, %v685_v18  ;;  %v776_v18 = vld [vmem:[#allocation5] sm:$0xff] }
 0x353   :  { %v712_v47 = vadd.s32 %v711_v42, %v701_v41  ;;  %799 = vmatpush.msrb.mxu0 %v784_v53 }
 0x354   :  { %v690_v45 = vadd.s32 %v689_v5, %v679_v39 }
 0x355   :  { %v713_v2 = vadd.s32 %v712_v47, %v703_v46  ;;  %800 = vmatpush.msrb.mxu0 %v783_v8 }
 0x356   :  { %v691_v51 = vadd.s32 %v690_v45, %v681_v4 }
 0x357   :  { %v717_v48 = vadd.s32 1, %v713_v2  ;;  %801 = vmatpush.msrb.mxu0 %v782_v12 }
 0x358   :  { %vm716_vm1 = vc.u32 %v691_v51, %v710_v52  ;;  %v715_v23 = vadd.s32 %v710_v52, %v691_v51 }
 0x359   :  { %v718_v6 = vsel %vm716_vm1, %v717_v48, %v713_v2  ;;  %802 = vmatpush.msrb.mxu0 %v781_v17 }
 0x35a   :  { %v719_v59 = vadd.s32 %v718_v6, %v714_v57 }
 0x35b   :  { %803 = vmatpush.msrb.mxu0 %v780_v20 }
 0x35c   :  { %v720_v61 = vadd.s32 536870912, %v719_v59 }
 0x35d   :  { %804 = vmatpush.msrb.mxu0 %v779_v21 }
 0x35e   :  { %v721_v0 = vshrl.u32 %v720_v61, 30 }
 0x35f   :  { %805 = vmatpush.msrb.mxu0 %v778_v54 }
 0x360   :  { %v722_v1 = vshll.u32 %v721_v0, 30  ;;  %v745_v41 = vsub.s32 4, %v721_v0 }
 0x361   :  { %806 = vmatpush.msrb.mxu0 %v777_v27 }
 0x362   :  { %v723_v7 = vsub.s32 %v719_v59, %v722_v1  ;;  %v746_v45 = vsel %vm623_vm4, %v745_v41, %v721_v0 }
 0x363   :  { %807 = vmatpush.msrb.mxu0 %v776_v18  ;;  %v748_v49 = vsel %vm622_vm5, 0, %v746_v45 }
 0x364   :  { %vm724_vm2 = vcmp.lt.s32.totalorder %v723_v7, 0  ;;  %v725_v55 = vsub.s32 0, %v723_v7  ;;  %v765_v56 = vadd.s32 3, %v748_v49 }
 0x366   :  { %v726_v15 = vsel %vm724_vm2, %v725_v55, %v723_v7  ;;  %v766_v6 = vand.u32 3, %v765_v56 }
 0x367   :  { %v727_v3 = vclz %v726_v15 }
 0x368   :  { %vm768_vm6 = vcmp.eq.s32.totalorder %v766_v6, 0  ;;  %vm771_vm7 = vcmp.eq.s32.totalorder %v766_v6, 2  ;;  %vm767_vm8 = vcmp.lt.s32.totalorder %v766_v6, 2 }
 0x369   :  { %v998_v35 = vadd.s32 4294967294, %v727_v3 }
 0x36b   :  { %vm999_vm3 = vcmp.lt.s32.totalorder %v998_v35, 0 }
 0x36c   :  { %v730_v10 = vsel %vm999_vm3, 0, %v998_v35 }
 0x36d   :  { %v731_v24 = vsub.s32 32, %v730_v10  ;;  %v735_v26 = vsub.s32 4294967266, %v730_v10  ;;  %v732_v29 = vshll.u32 %v723_v7, %v730_v10 }
 0x36f   :  { %v733_v32 = vshrl.u32 %v715_v23, %v731_v24  ;;  %v736_v11 = vadd.s32 127, %v735_v26 }
 0x371   :  { %v734_v36 = vor.u32 %v733_v32, %v732_v29  ;;  %v737_v30 = vshll.u32 %v736_v11, 23 }
 0x373   :  { %v738_v37 = vor.u32 4788187, %v737_v30  ;;  %v741_v33 = vcvt.s32.f32 %v734_v36 }
 0x375   :  { %v739_v38 = vand.u32 2147483647, %v738_v37 }
 0x377   :  { %v742_v39 = vmul.f32 %v741_v33, %v739_v38 }
 0x379   :  { %v743_v5 = vxor.u32 2147483648, %v742_v39 }
 0x37b   :  { %v744_v40 = vsel %vm623_vm4, %v743_v5, %v742_v39 }
 0x37c   :  { %v747_v42 = vsel %vm622_vm5, %v1346_v34, %v744_v40 }
 0x37d   :  { %v749_v43 = vmul.f32 %v747_v42, %v747_v42 }
 0x37f   :  { %v757_v44 = vmul.f32 -0.00019511016, %v749_v43  ;;  %v750_v4 = vmul.f32 -0.001358992, %v749_v43 }
 0x381   :  { %v758_v46 = vadd.f32 0.008332121, %v757_v44  ;;  %v751_v47 = vadd.f32 0.041655596, %v750_v4 }
 0x383   :  { %v759_v51 = vmul.f32 %v758_v46, %v749_v43  ;;  %v752_v52 = vmul.f32 %v751_v47, %v749_v43 }
 0x385   :  { %v760_v13 = vadd.f32 -0.16666654, %v759_v51  ;;  %v753_v2 = vadd.f32 -0.4999988, %v752_v52 }
 0x387   :  { %v761_v48 = vmul.f32 %v760_v13, %v749_v43  ;;  %v754_v50 = vmul.f32 %v753_v2, %v749_v43 }
 0x389   :  { %v762_v57 = vadd.f32 1.0, %v761_v48  ;;  %v755_v31 = vadd.f32 1.0, %v754_v50 }
 0x38b   :  { %v763_v58 = vmul.f32 %v762_v57, %v747_v42  ;;  %v772_v59 = vxor.u32 2147483648, %v755_v31 }
 0x38d   :  { %v769_v60 = vxor.u32 2147483648, %v763_v58  ;;  %v773_v63 = vsel %vm771_vm7, %v772_v59, %v763_v58 }
 0x38f   :  { %v770_v61 = vsel %vm768_vm6, %v755_v31, %v769_v60 }
 0x390   :  { %v774_v0 = vsel %vm767_vm8, %v770_v61, %v773_v63 }
 0x391   :  { %v775_v9 = vsel %vm764_vm9, nan, %v774_v0 }
 0x392   :  { %808 = vmatmul.f32.vlgmr.msrb.gmra.mxu0 %v775_v9 }
 0x40f   :  { %v1407_v1 = vpop.f32.mrf.mxu0 }
 0x410   :  { %v815_v53 = vand.u32 2139095040, %v1407_v1  ;;  %v812_v55 = vand.u32 2147483647, %v1407_v1  ;;  %vm814_vm6 = vcmp.lt.s32.totalorder %v1407_v1, 0 }
 0x412   :  { %v816_v7 = vshrl.u32 %v815_v53, 23  ;;  %v819_v15 = vand.u32 8388607, %v812_v55  ;;  %vm813_vm7 = vcmp.le.f32.partialorder %v812_v55, 0.7853982 }
 0x414   :  { %v1000_v8 = vadd.s32 4294967169, %v816_v7  ;;  %v820_v34 = vor.u32 8388608, %v819_v15 }
 0x416   :  { %v822_v12 = vadd.s32 1, %v1000_v8 }
 0x418   :  { %vm823_vm10 = vcmp.gt.s32.totalorder %v822_v12, 0 }
 0x419   :  { %v824_v3 = vsel %vm823_vm10, %v822_v12, 0 }
 0x41a   :  { %v826_v17 = vand.u32 31, %v824_v3  ;;  %v1413_v20 = vshrl.u32 %v824_v3, 5 }
 0x41c   :  { %v827_v35 = vsub.s32 32, %v826_v17  ;;  %v829_v21 = vshll.u32 %v1097_v14, %v826_v17  ;;  %v832_v10 = vshll.u32 %v1098_v16, %v826_v17  ;;  %v835_v26 = vshll.u32 %v1099_v19, %v826_v17 }
 0x41d   :  { %v838_v27 = vshll.u32 %v1100_v22, %v826_v17  ;;  %v841_v32 = vshll.u32 %v1101_v25, %v826_v17  ;;  %vm844_vm11 = vcmp.lt.s32.totalorder %v1413_v20, 1  ;;  %vm847_vm12 = vcmp.lt.s32.totalorder %v1413_v20, 4 }
 0x41e   :  { %v830_v23 = vshrl.u32 %v1098_v16, %v827_v35  ;;  %v833_v24 = vshrl.u32 %v1099_v19, %v827_v35  ;;  %v836_v54 = vshrl.u32 %v1100_v22, %v827_v35  ;;  %v839_v29 = vshrl.u32 %v1101_v25, %v827_v35 }
 0x41f   :  { %v842_v11 = vshrl.u32 %v1102_v28, %v827_v35  ;;  %v1426_v16 = vshll.u32 %v820_v34, 8  ;;  %vm846_vm13 = vcmp.lt.s32.totalorder %v1413_v20, 3  ;;  %vm845_vm14 = vcmp.lt.s32.totalorder %v1413_v20, 2 }
 0x420   :  { %v831_v18 = vor.u32 %v830_v23, %v829_v21  ;;  %v834_v36 = vor.u32 %v833_v24, %v832_v10  ;;  %v837_v30 = vor.u32 %v836_v54, %v835_v26  ;;  %v840_v37 = vor.u32 %v839_v29, %v838_v27 }
 0x421   :  { %v843_v38 = vor.u32 %v842_v11, %v841_v32  ;;  %v861_v41 = vand.u32 65535, %v1426_v16  ;;  %v862_v42 = vshrl.u32 %v1426_v16, 16  ;;  %v828_v53 = vshrl.u32 %v1097_v14, %v827_v35 }
 0x422   :  { %v852_v19 = vsel %vm844_vm11, %v831_v18, %v834_v36  ;;  %v856_v22 = vsel %vm844_vm11, %v834_v36, %v837_v30  ;;  %v853_v25 = vsel %vm847_vm12, %v840_v37, 920167782  ;;  %v849_v63 = vsel %vm847_vm12, %v837_v30, 2102212464 }
 0x423   :  { %v857_v28 = vsel %vm847_vm12, %v843_v38, 1326507024  ;;  %v854_v33 = vsel %vm846_vm13, %v837_v30, %v853_v25  ;;  %v848_v17 = vsel %vm844_vm11, %v828_v53, %v831_v18  ;;  %v850_v34 = vsel %vm846_vm13, %v834_v36, %v849_v63 }
 0x424   :  { %v858_v39 = vsel %vm846_vm13, %v840_v37, %v857_v28  ;;  %v855_v5 = vsel %vm845_vm14, %v852_v19, %v854_v33  ;;  %v851_v14 = vsel %vm845_vm14, %v848_v17, %v850_v34  ;;  %vm955_vm11 = vweird.f32 %v1407_v1 }
 0x425   :  { %v859_v40 = vsel %vm845_vm14, %v856_v22, %v858_v39  ;;  %v885_v4 = vand.u32 65535, %v855_v5  ;;  %v886_v45 = vshrl.u32 %v855_v5, 16  ;;  %v905_v27 = vmul.u32 %v1426_v16, %v851_v14 }
 0x426   :  { %v863_v43 = vand.u32 65535, %v859_v40  ;;  %v864_v44 = vshrl.u32 %v859_v40, 16 }
 0x427   :  { %v888_v49 = vmul.u32 %v886_v45, %v861_v41  ;;  %v889_v51 = vmul.u32 %v885_v4, %v862_v42  ;;  %v887_v56 = vmul.u32 %v885_v4, %v861_v41  ;;  %v890_v31 = vmul.u32 %v886_v45, %v862_v42 }
 0x428   :  { %v866_v46 = vmul.u32 %v864_v44, %v861_v41  ;;  %v867_v47 = vmul.u32 %v863_v43, %v862_v42  ;;  %v865_v52 = vmul.u32 %v863_v43, %v861_v41  ;;  %v868_v2 = vmul.u32 %v864_v44, %v862_v42 }
 0x429   :  { %v891_v48 = vshll.u32 %v888_v49, 16  ;;  %v893_v58 = vshll.u32 %v889_v51, 16  ;;  %v892_v15 = vshrl.u32 %v888_v49, 16  ;;  %v894_v23 = vshrl.u32 %v889_v51, 16 }
 0x42a   :  { %v869_v13 = vshll.u32 %v866_v46, 16  ;;  %v871_v50 = vshll.u32 %v867_v47, 16  ;;  %v870_v7 = vshrl.u32 %v866_v46, 16  ;;  %v872_v21 = vshrl.u32 %v867_v47, 16 }
 0x42b   :  { %vm895_vm0 = vc.u32 %v887_v56, %v891_v48  ;;  %v897_v59 = vadd.s32 %v891_v48, %v887_v56 }
 0x42c   :  { %vm873_vm15 = vc.u32 %v865_v52, %v869_v13  ;;  %v875_v57 = vadd.s32 %v869_v13, %v865_v52  ;;  %v896_v61 = vsel %vm895_vm0, 1, %v1103_v62 }
 0x42d   :  { %v874_v6 = vsel %vm873_vm15, 1, %v1103_v62  ;;  %v898_v9 = vadd.s32 %v896_v61, %v890_v31  ;;  %vm899_vm2 = vc.u32 %v897_v59, %v893_v58  ;;  %v901_v54 = vadd.s32 %v897_v59, %v893_v58 }
 0x42e   :  { %v876_v60 = vadd.s32 %v874_v6, %v868_v2  ;;  %vm877_vm1 = vc.u32 %v875_v57, %v871_v50  ;;  %v900_v12 = vsel %vm899_vm2, 1, %v1103_v62 }
 0x42f   :  { %v878_v0 = vsel %vm877_vm1, 1, %v1103_v62  ;;  %v902_v3 = vadd.s32 %v900_v12, %v898_v9 }
 0x430   :  { %v880_v8 = vadd.s32 %v878_v0, %v876_v60 }
 0x431   :  { %v903_v24 = vadd.s32 %v902_v3, %v892_v15 }
 0x432   :  { %v881_v10 = vadd.s32 %v880_v8, %v870_v7 }
 0x433   :  { %v904_v35 = vadd.s32 %v903_v24, %v894_v23 }
 0x434   :  { %v882_v26 = vadd.s32 %v881_v10, %v872_v21 }
 0x435   :  { %v908_v62 = vadd.s32 1, %v904_v35 }
 0x436   :  { %vm907_vm3 = vc.u32 %v882_v26, %v901_v54  ;;  %v906_v20 = vadd.s32 %v901_v54, %v882_v26 }
 0x437   :  { %v909_v29 = vsel %vm907_vm3, %v908_v62, %v904_v35 }
 0x438   :  { %v910_v32 = vadd.s32 %v909_v29, %v905_v27 }
 0x43a   :  { %v911_v11 = vadd.s32 536870912, %v910_v32 }
 0x43c   :  { %v912_v18 = vshrl.u32 %v911_v11, 30 }
 0x43e   :  { %v913_v30 = vshll.u32 %v912_v18, 30  ;;  %v936_v47 = vsub.s32 4, %v912_v18 }
 0x440   :  { %v914_v36 = vsub.s32 %v910_v32, %v913_v30  ;;  %v937_v2 = vsel %vm814_vm6, %v936_v47, %v912_v18 }
 0x441   :  { %v939_v50 = vsel %vm813_vm7, 0, %v937_v2 }
 0x442   :  { %vm915_vm4 = vcmp.lt.s32.totalorder %v914_v36, 0  ;;  %v916_v37 = vsub.s32 0, %v914_v36  ;;  %v956_v59 = vadd.s32 3, %v939_v50 }
 0x444   :  { %v917_v38 = vsel %vm915_vm4, %v916_v37, %v914_v36  ;;  %v957_v0 = vand.u32 3, %v956_v59 }
 0x445   :  { %v918_v19 = vclz %v917_v38 }
 0x446   :  { %vm959_vm8 = vcmp.eq.s32.totalorder %v957_v0, 0  ;;  %vm962_vm9 = vcmp.eq.s32.totalorder %v957_v0, 2  ;;  %vm958_vm10 = vcmp.lt.s32.totalorder %v957_v0, 2 }
 0x447   :  { %v1001_v22 = vadd.s32 4294967294, %v918_v19 }
 0x449   :  { %vm1002_vm5 = vcmp.lt.s32.totalorder %v1001_v22, 0 }
 0x44a   :  { %v921_v25 = vsel %vm1002_vm5, 0, %v1001_v22 }
 0x44b   :  { %v922_v28 = vsub.s32 32, %v921_v25  ;;  %v926_v33 = vsub.s32 4294967266, %v921_v25  ;;  %v923_v39 = vshll.u32 %v914_v36, %v921_v25 }
 0x44d   :  { %v924_v5 = vshrl.u32 %v906_v20, %v922_v28  ;;  %v927_v40 = vadd.s32 127, %v926_v33 }
 0x44f   :  { %v925_v16 = vor.u32 %v924_v5, %v923_v39  ;;  %v928_v41 = vshll.u32 %v927_v40, 23 }
 0x451   :  { %v929_v42 = vor.u32 4788187, %v928_v41  ;;  %v932_v44 = vcvt.s32.f32 %v925_v16 }
 0x453   :  { %v930_v43 = vand.u32 2147483647, %v929_v42 }
 0x455   :  { %v933_v4 = vmul.f32 %v932_v44, %v930_v43 }
 0x457   :  { %v934_v45 = vxor.u32 2147483648, %v933_v4 }
 0x459   :  { %v935_v46 = vsel %vm814_vm6, %v934_v45, %v933_v4 }
 0x45a   :  { %v938_v49 = vsel %vm813_vm7, %v1407_v1, %v935_v46 }
 0x45b   :  { %v940_v51 = vmul.f32 %v938_v49, %v938_v49 }
 0x45d   :  { %v948_v52 = vmul.f32 -0.00019511016, %v940_v51  ;;  %v941_v13 = vmul.f32 -0.001358992, %v940_v51 }
 0x45f   :  { %v949_v56 = vadd.f32 0.008332121, %v948_v52  ;;  %v942_v48 = vadd.f32 0.041655596, %v941_v13 }
 0x461   :  { %v950_v57 = vmul.f32 %v949_v56, %v940_v51  ;;  %v943_v31 = vmul.f32 %v942_v48, %v940_v51 }
 0x463   :  { %v951_v6 = vadd.f32 -0.16666654, %v950_v57  ;;  %v944_v58 = vadd.f32 -0.4999988, %v943_v31 }
 0x465   :  { %v952_v60 = vmul.f32 %v951_v6, %v940_v51  ;;  %v945_v61 = vmul.f32 %v944_v58, %v940_v51 }
 0x467   :  { %v953_v63 = vadd.f32 1.0, %v952_v60  ;;  %v946_v55 = vadd.f32 1.0, %v945_v61 }
 0x469   :  { %v954_v9 = vmul.f32 %v953_v63, %v938_v49  ;;  %v963_v53 = vxor.u32 2147483648, %v946_v55 }
 0x46b   :  { %v960_v7 = vxor.u32 2147483648, %v954_v9  ;;  %v964_v12 = vsel %vm962_vm9, %v963_v53, %v954_v9 }
 0x46d   :  { %v961_v8 = vsel %vm959_vm8, %v946_v55, %v960_v7 }
 0x46e   :  { %v965_v15 = vsel %vm958_vm10, %v961_v8, %v964_v12 }
 0x46f   :  { %v966_v3 = vsel %vm955_vm11, nan, %v965_v15 }
 0x470   :  { %967 = vst [vmem:[#allocation7] sm:$0xff] %v966_v3 }
 0x471   :  { %978 = dma.vmem_to_hbm [thread:$0]  %s974_s1, 128, %s976_s5, [#allocation4]  }
 0x472   :  { %1091 = dma.done.wait [#allocation4], 128  }
 0x473   :  { %1092 = vsyncadd [#allocation4], 4294967168 }
 0x474   :  { %983 = vsyncpa [#allocation3], 1 }
 0x475   :  { %984 = vsyncpa [#allocation6], 1 }
 0x476   :  { %985 = vsyncpa [#allocation4], 1 }

</bundles_post_ra>
